<compile_context>
chip_gen: v7x
topology: tpu7x:2x2x1
jax: 0.10.0
libtpu: 0.0.40
codegen_flags: <defaults>
</compile_context>

<pallas_src>
import jax
import jax.numpy as jnp
from jax.experimental import pallas as pl
from jax.experimental.pallas import tpu as pltpu


def _round_up(x, m):
    return ((x + m - 1) // m) * m


def lama_pooling_kernel(x_ref, o_ref):
    # x_ref: (BB, T, F) input block; o_ref: (BB, round_up(4*F, 128)) lane-dense.
    x = x_ref[...]
    BB, T, F = x.shape
    out_dtype = o_ref.dtype

    # One f32 sublane reduction over the full history; reused by 'avg' and the
    # (all-ones-weight) softmax attention pooling.
    xf = x.astype(jnp.float32)
    sum_all = jnp.sum(xf, axis=1)                       # (BB, F)
    last = xf[:, T - 1, :]                              # (BB, F)   'last'
    sum_m = sum_all - last                              # sum over first T-1 rows
    avg = sum_m * jnp.float32(1.0 / (T - 1))            # 'avg'
    attn_pool = sum_m                                   # 'softmax' (weights == 1)

    # 'max' over x[:, :T-1, :] in the input's native dtype via a (1, T, 1)
    # additive {0, -inf} mask -- no (BB, T, F) iota/select temporaries and no
    # f32 upcast on the max pass (bf16 is VPU-native on v6e/v7x).
    t_iota = jax.lax.broadcasted_iota(jnp.int32, (1, T, 1), 1)
    mask = jnp.where(t_iota < T - 1,
                     jnp.asarray(0, x.dtype),
                     jnp.asarray(-jnp.inf, x.dtype))    # (1, T, 1)
    mx = jnp.max(x + mask, axis=1)                      # (BB, F)   'max'

    # Single lane-dense store in the PyTorch concat order; zero-pad the tail if
    # 4*F was rounded up to a multiple of 128 to keep the store unmasked.
    parts = [last.astype(out_dtype), avg.astype(out_dtype),
             mx.astype(out_dtype), attn_pool.astype(out_dtype)]
    pad = o_ref.shape[-1] - 4 * F
    if pad:
        parts.append(jnp.zeros((BB, pad), out_dtype))
    o_ref[...] = jnp.concatenate(parts, axis=-1)


def _vmem_plan(B, T, F, dtype, block_b=None):
    """Pick rows-per-grid-step and a matching scoped-VMEM limit.

    The estimate covers the double-buffered input/output pipeline blocks plus
    the block-sized in-kernel temporaries (f32 upcast, x+mask intermediate,
    concat slab), so the chosen block never silently overshoots the VMEM limit
    we set via CompilerParams.
    """
    t_pad = _round_up(T, 8)
    f_pad = _round_up(F, 128)
    out_f = _round_up(4 * F, 128)
    in_bytes = jnp.dtype(dtype).itemsize
    bytes_per_row = (
        2 * t_pad * f_pad * in_bytes      # double-buffered input block
        + 2 * out_f * in_bytes            # double-buffered output rows
        + 2 * t_pad * f_pad * 4           # f32 temporaries (upcast copy, x+mask)
        + 8 * out_f * 4                   # (F,)-wide f32 row vectors + concat slab
    )
    # Target for blocks + temporaries: ~20 MiB keeps the total comfortably
    # under v7x's 64 MiB physical VMEM (with Mosaic-internal headroom) while
    # being large enough to sit at the HBM roofline on v5e/v6e (512+ row tiles).
    budget = 20 << 20
    if block_b is None:
        bb = max(1, min(B, budget // bytes_per_row))
        # Guarantee >= 2 grid steps whenever B allows, so a "parallel" batch
        # axis is split across both v7x TensorCores (negligible cost elsewhere).
        two_step_cap = (pl.cdiv(B, 2) // 8) * 8
        if two_step_cap >= 8:
            bb = min(bb, two_step_cap)
        if bb < B:
            # Output block's second-minor dim must be a multiple of 8 (or == B).
            bb = max(8, (bb // 8) * 8)
    else:
        bb = block_b
    # Scoped-VMEM limit sized to what this bb actually needs (the forced 8-row
    # minimum for very large T*F may exceed `budget`; we raise the limit rather
    # than rely on the 16/32 MiB scoped defaults). Capped below v7x's 64 MiB.
    # TODO(synk): for extreme T*F where even an 8-row block exceeds ~48 MiB,
    # add a second "arbitrary" grid axis over T with VMEM sum/max accumulators.
    need = bb * bytes_per_row
    vmem_limit = int(min(max(need + need // 2, 24 << 20), 48 << 20))
    return bb, out_f, vmem_limit


def lama_pooling(x, conv_w=None, conv_b=None, *, block_b=None):
    """LamaPooling forward: x [B, T, F] -> [B, 4*F] (last | avg | max | softmax).

    conv_w / conv_b (the TemporalAttentionPooling Conv1d parameters) are
    accepted for interface parity but are mathematically unused: Softmax(dim=1)
    over the size-1 channel axis yields all-ones attention weights, so the
    attention-pooled output equals the sum over x[:, :-1, :]. This matches the
    PyTorch module for all finite inputs; NaN/Inf through the dead exp path is
    the only possible divergence. Requires history_len T >= 2 (same as PyTorch).
    """
    B, T, F = x.shape
    if T < 2:
        raise ValueError("LamaPooling requires history_len >= 2")
    bb, out_f, vmem_limit = _vmem_plan(B, T, F, x.dtype, block_b)
    grid = (pl.cdiv(B, bb),)
    out = pl.pallas_call(
        lama_pooling_kernel,
        out_shape=jax.ShapeDtypeStruct((B, out_f), x.dtype),
        grid=grid,
        in_specs=[pl.BlockSpec((bb, T, F), lambda i: (i, 0, 0))],
        out_specs=pl.BlockSpec((bb, out_f), lambda i: (i, 0)),
        compiler_params=pltpu.CompilerParams(
            dimension_semantics=("parallel",),
            vmem_limit_bytes=vmem_limit),
    )(x)
    return out if out_f == 4 * F else out[:, : 4 * F]


def lama_pooling_ref(x, conv_w, conv_b):
    """Pure-JAX reference mirroring the PyTorch module exactly."""
    last = x[:, -1:, :]
    xm = x[:, :-1, :]
    avg = xm.mean(axis=1, keepdims=True)
    mx = xm.max(axis=1, keepdims=True)
    logits = jnp.einsum("btf,f->bt", xm, conv_w[0]) + conv_b[0, 0]    # (B, T-1)
    attn = jax.nn.softmax(logits[:, None, :], axis=1)                 # size-1 dim -> ones
    attn_pool = (attn.transpose(0, 2, 1) * xm).sum(axis=1, keepdims=True)
    out = jnp.concatenate([last, avg, mx, attn_pool], axis=1)         # (B, 4, F)
    return out.reshape(x.shape[0], -1)


if __name__ == "__main__":
    key = jax.random.PRNGKey(0)
    kx, kw, kb, kx2 = jax.random.split(key, 4)

    # Primary small case (history_len=8, feature_size=32, batch=2).
    B, T, F = 2, 8, 32
    x = jax.random.normal(kx, (B, T, F), dtype=jnp.float32)

    # Conv1d(F, 1, kernel_size=1, bias=True) params (outer_init-style small
    # uniform). They cancel mathematically; kept for interface fidelity.
    conv_w = jax.random.uniform(kw, (1, F), jnp.float32, minval=-3e-3, maxval=3e-3)
    conv_b = jax.random.uniform(kb, (1, 1), jnp.float32, minval=-3e-3, maxval=3e-3)

    out = jax.block_until_ready(lama_pooling(x, conv_w, conv_b))
    ref = lama_pooling_ref(x, conv_w, conv_b)
    assert out.shape == (B, 4 * F), out.shape
    assert jnp.allclose(out, ref, atol=1e-5, rtol=1e-5), "mismatch vs reference (B=2)"

    # Multi-block case: exercises the >=2-grid-step cap and a partial last block.
    B2 = 20
    x2 = jax.random.normal(kx2, (B2, T, F), dtype=jnp.float32)
    out2 = jax.block_until_ready(lama_pooling(x2, conv_w, conv_b))
    ref2 = lama_pooling_ref(x2, conv_w, conv_b)
    assert out2.shape == (B2, 4 * F), out2.shape
    assert jnp.allclose(out2, ref2, atol=1e-5, rtol=1e-5), "mismatch vs reference (B=20)"

    print("KERNEL_OK")
</pallas_src>

<mosaic_0001>
module attributes {stable_mosaic.version = 11 : i64} {
  func.func @lama_pooling_kernel(%arg0: i32, %arg1: memref<2x8x32xf32, #tpu.memory_space<vmem>>, %arg2: memref<2x128xf32, #tpu.memory_space<vmem>>) attributes {dimension_semantics = [#tpu.dimension_semantics<parallel>], iteration_bounds = array<i64: 1>, scalar_prefetch = 0 : i64, scratch_operands = 0 : i64, tpu.core_type = #tpu.core_type<tc>, window_params = [{transform_indices = @transform_0, window_bounds = array<i64: 2, 8, 32>}, {transform_indices = @transform_1, window_bounds = array<i64: 2, 128>}]} {
    %c0 = arith.constant 0 : index
    %c0_0 = arith.constant 0 : index
    %c0_1 = arith.constant 0 : index
    %0 = vector.load %arg1[%c0, %c0_0, %c0_1] : memref<2x8x32xf32, #tpu.memory_space<vmem>>, vector<2x8x32xf32>
    %cst = arith.constant dense<0.000000e+00> : vector<2x32xf32>
    %1 = vector.multi_reduction <add>, %0, %cst [1] : vector<2x8x32xf32> to vector<2x32xf32>
    %2 = vector.extract_strided_slice %0 {offsets = [0, 7, 0], sizes = [2, 1, 32], strides = [1, 1, 1]} : vector<2x8x32xf32> to vector<2x1x32xf32>
    %3 = vector.shape_cast %2 : vector<2x1x32xf32> to vector<2x32xf32>
    %4 = arith.subf %1, %3 : vector<2x32xf32>
    %cst_2 = arith.constant 0.142857149 : f32
    %5 = vector.broadcast %cst_2 : f32 to vector<2x32xf32>
    %6 = arith.mulf %4, %5 : vector<2x32xf32>
    %7 = tpu.iota {dimensions = array<i32: 1>} : vector<1x8x1xi32>
    %c7_i32 = arith.constant 7 : i32
    %8 = vector.broadcast %c7_i32 : i32 to vector<1x8x1xi32>
    %9 = arith.cmpi slt, %7, %8 : vector<1x8x1xi32>
    %cst_3 = arith.constant 0.000000e+00 : f32
    %cst_4 = arith.constant 0xFF800000 : f32
    %10 = vector.broadcast %cst_3 : f32 to vector<1x8x1xf32>
    %11 = vector.broadcast %cst_4 : f32 to vector<1x8x1xf32>
    %12 = arith.select %9, %10, %11 : vector<1x8x1xi1>, vector<1x8x1xf32>
    %13 = vector.broadcast %12 : vector<1x8x1xf32> to vector<2x8x32xf32>
    %14 = arith.addf %0, %13 : vector<2x8x32xf32>
    %cst_5 = arith.constant dense<0xFF800000> : vector<2x32xf32>
    %15 = vector.multi_reduction <maximumf>, %14, %cst_5 [1] : vector<2x8x32xf32> to vector<2x32xf32>
    %16 = tpu.concatenate %3, %6, %15, %4 in 1 : vector<2x32xf32>, vector<2x32xf32>, vector<2x32xf32>, vector<2x32xf32> -> vector<2x128xf32>
    %c0_6 = arith.constant 0 : index
    %c0_7 = arith.constant 0 : index
    %17 = vector.load %arg2[%c0_6, %c0_7] : memref<2x128xf32, #tpu.memory_space<vmem>>, vector<2x128xf32>
    tpu.vector_store %arg2[%c0_6, %c0_7], %16 {strides = array<i32>} : memref<2x128xf32, #tpu.memory_space<vmem>>, vector<2x128xf32>,
    return
  }
  func.func @transform_0(%arg0: i32) -> (i32, i32, i32) {
    %c0_i32 = arith.constant 0 : i32
    %c0_i32_0 = arith.constant 0 : i32
    %c0_i32_1 = arith.constant 0 : i32
    return %arg0, %c0_i32, %c0_i32_0 : i32, i32, i32
  }
  func.func @transform_1(%arg0: i32) -> (i32, i32) {
    %c0_i32 = arith.constant 0 : i32
    %c0_i32_0 = arith.constant 0 : i32
    return %arg0, %c0_i32 : i32, i32
  }
}

</mosaic_0001>

<bundles_post_ra>
// kernel: tpu_custom_call.1
= control target key start
LH: loop header
LB: loop body
LE: loop exit
PB: predicated region body
PF: predicated region fallthrough
CT: control target
= control target key end

     0   :  { %6 = vsyncpa [#allocation3], 0  ;;  %s224_s0 = inlined_call_operand.hbm [shape: f32[2,8,32], index: 0, kind: input, shape index: {}]   ;;  %s225_s1 = inlined_call_operand.hbm [shape: f32[2,128], index: 1, kind: output, shape index: {}]  }
   0x1   :  { %7 = vsyncpa [#allocation4], 0  ;;  %s176_s6 = smov [#allocation2]   ;;  %s128_s10 = scalar_lea.hbm %s224_s0, 256 }
   0x2   :  { %s13_s7 = sshll.u32 %s176_s6, 4  ;;  %p129_p0 = scmp.ne.s32.totalorder %s224_s0, %s128_s10  ;;  %s14_s7 = int_to_ptr.vmem [resolvable:$true] %s13_s7 }
   0x3   :  { %p132_p1 = scmp.lt.u32.totalorder %s128_s10, %s224_s0 }
   0x5   :  { %p134_p2 = pnand %p132_p1, %p129_p0 }
   0x7   :  { %137 = shalt.err (!%p134_p2)
}
   0x8   :  { %s138_s15 = scalar_lea.vmem %s14_s7, 256  ;;  %p143_p4 = scmp.lt.s32.totalorder %s14_s7, %s14_s7 }
   0x9   :  { %p139_p3 = scmp.ne.s32.totalorder %s14_s7, %s138_s15  ;;  %p144_p5 = scmp.lt.s32.totalorder %s138_s15, %s138_s15 }
   0xb   :  { %p145_p6 = por %p144_p5, %p143_p4 }
   0xd   :  { %p146_p7 = pnand %p145_p6, %p139_p3 }
   0xf   :  { %149 = shalt.err (!%p146_p7)
}
  0x10   :  { %s177_s16 = smov 128   ;;  %s178_s17 = smov 8  }
  0x11   :  { %19 = dma.hbm_to_vmem [thread:$0]  %s224_s0, 256, %s14_s7, [#allocation3], %s177_s16, %s177_s16, %s178_s17  }
  0x12   :  { %172 = dma.done.wait [#allocation3], 256  }
  0x13   :  { %173 = vsyncadd [#allocation3], 4294967040  ;;  %v44_v0 = vlaneseq  ;;  %vm25_vm1 = vcmask 261120   ;;  %v179_v2 = vmov -inf   ;;  %v23_v4 = vld [vmem:[#allocation2] sm:$0xff]  ;;  %v24_v5 = vld [vmem:[#allocation2 + $0x8] sm:$0xff] }
  0x14   :  { %v26_v8 = vsel %vm25_vm1, %v23_v4, 0.0  ;;  %v33_v9 = vsel %vm25_vm1, %v24_v5, 0.0  ;;  %s180_s0 = smov 64   ;;  %s181_s20 = smov 32   ;;  %v66_v44 = vrot.slane %v24_v5, 7  ;;  %vm100_vm2 = vcmask 785408  }
  0x15   :  { %v45_v1 = vshrl.u32 %v44_v0, 7  ;;  %v27_v10 = vrot.slane %v26_v8, 4  ;;  %v34_v11 = vrot.slane %v33_v9, 4  ;;  %s182_s21 = smov 96   ;;  %vm97_vm3 = vcmask 523264   ;;  %s183_s22 = smov [#allocation5]  }
  0x16   :  { %s111_s23 = sshll.u32 %s183_s22, 4  ;;  %s112_s23 = int_to_ptr.vmem [resolvable:$true] %s111_s23 }
  0x17   :  { %vm46_vm0 = vcmp.lt.s32.totalorder %v45_v1, 7  ;;  %v28_v15 = vadd.f32 %v27_v10, %v26_v8  ;;  %v35_v17 = vadd.f32 %v34_v11, %v33_v9  ;;  %s150_s24 = scalar_lea.vmem %s112_s23, 32  ;;  %p155_p9 = scmp.lt.s32.totalorder %s112_s23, %s112_s23 }
  0x18   :  { %v47_v3 = vsel %vm46_vm0, 0.0, %v179_v2  ;;  %p151_p8 = scmp.ne.s32.totalorder %s112_s23, %s150_s24  ;;  %p156_p10 = scmp.lt.s32.totalorder %s150_s24, %s150_s24 }
  0x19   :  { %v48_v6 = vadd.f32 %v47_v3, %v23_v4  ;;  %v49_v7 = vadd.f32 %v47_v3, %v24_v5  ;;  %v29_v19 = vrot.slane %v28_v15, 2  ;;  %v36_v21 = vrot.slane %v35_v17, 2 }
  0x1a   :  { %p157_p11 = por %p156_p10, %p155_p9 }
  0x1b   :  { %v50_v12 = vsel %vm25_vm1, %v48_v6, -inf  ;;  %v57_v13 = vsel %vm25_vm1, %v49_v7, -inf  ;;  %v30_v23 = vadd.f32 %v29_v19, %v28_v15  ;;  %v37_v25 = vadd.f32 %v36_v21, %v35_v17 }
  0x1c   :  { %v51_v14 = vrot.slane %v50_v12, 4  ;;  %v58_v16 = vrot.slane %v57_v13, 4  ;;  %p158_p12 = pnand %p157_p11, %p151_p8 }
  0x1d   :  { %v31_v27 = vrot.slane %v30_v23, 1  ;;  %v38_v29 = vrot.slane %v37_v25, 1 }
  0x1e   :  { %v52_v18 = vmax.f32 %v50_v12, %v51_v14  ;;  %v59_v20 = vmax.f32 %v57_v13, %v58_v16 }
  0x1f   :  { %v32_v31 = vadd.f32 %v31_v27, %v30_v23  ;;  %v39_v33 = vadd.f32 %v38_v29, %v37_v25 }
  0x20   :  { %v53_v22 = vrot.slane %v52_v18, 2  ;;  %v60_v24 = vrot.slane %v59_v20, 2 }
  0x21   :  { %v40_v35 = vsub.f32 %v32_v31, %v23_v4  ;;  %v41_v36 = vsub.f32 %v39_v33, %v24_v5 }
  0x22   :  { %v54_v26 = vmax.f32 %v52_v18, %v53_v22  ;;  %v61_v28 = vmax.f32 %v59_v20, %v60_v24 }
  0x23   :  { %v42_v37 = vmul.f32 0.14285715, %v40_v35  ;;  %v43_v39 = vmul.f32 0.14285715, %v41_v36  ;;  %v88_v41 = vrot.slane %v41_v36, 7 }
  0x24   :  { %v55_v30 = vrot.slane %v54_v26, 1  ;;  %v62_v32 = vrot.slane %v61_v28, 1 }
  0x25   :  { %72 = vrot.lane.b32.xlu0 %v42_v37, %s181_s20  ;;  %v71_v40 = vrot.slane %v43_v39, 7 }
  0x26   :  { %v56_v34 = vmax.f32 %v54_v26, %v55_v30  ;;  %v63_v38 = vmax.f32 %v61_v28, %v62_v32 }
  0x28   :  { %80 = vrot.lane.b32.xlu1 %v56_v34, %s180_s0 }
  0x29   :  { %74 = vrot.lane.b32.xlu0 %v71_v40, %s181_s20 }
  0x2c   :  { %82 = vrot.lane.b32.xlu1 %v63_v38, %s180_s0 }
  0x2d   :  { %89 = vrot.lane.b32.xlu0 %v40_v35, %s182_s21 }
  0x30   :  { %91 = vrot.lane.b32.xlu1 %v88_v41, %s182_s21 }
  0x97   :  { %v73_v43 = vpop.permute.xlu0 %72 }
  0x98   :  { %v95_v47 = vsel %vm25_vm1, %v23_v4, %v73_v43 }
  0x9a   :  { %v81_v42 = vpop.permute.xlu1 %80 }
  0x9b   :  { %v75_v46 = vpop.permute.xlu0 %74  ;;  %v98_v52 = vsel %vm97_vm3, %v95_v47, %v81_v42 }
  0x9c   :  { %v96_v48 = vsel %vm25_vm1, %v66_v44, %v75_v46 }
  0x9e   :  { %v83_v45 = vpop.permute.xlu1 %82 }
  0x9f   :  { %v99_v50 = vsel %vm97_vm3, %v96_v48, %v83_v45  ;;  %v90_v53 = vpop.permute.xlu0 %89 }
  0xa0   :  { %v101_v54 = vsel %vm100_vm2, %v98_v52, %v90_v53 }
  0xa1   :  { %103 = vst [vmem:[#allocation5 - $0x7] sm:$0x80] %v101_v54 }
  0xa2   :  { %v92_v49 = vpop.permute.xlu1 %91 }
  0xa3   :  { %v102_v51 = vsel %vm100_vm2, %v99_v50, %v92_v49 }
  0xa4   :  { %104 = vst [vmem:[#allocation5 + $0x1] sm:$0x1] %v102_v51 }
  0xa5   :  { %161 = shalt.err (!%p158_p12)
}
  0xa6   :  { %s162_s27 = scalar_lea.hbm %s225_s1, 32 }
  0xa7   :  { %p163_p13 = scmp.ne.s32.totalorder %s225_s1, %s162_s27  ;;  %p166_p0 = scmp.lt.u32.totalorder %s162_s27, %s225_s1 }
  0xa9   :  { %p168_p1 = pnand %p166_p0, %p163_p13 }
  0xab   :  { %171 = shalt.err (!%p168_p1)
}
  0xac   :  { %114 = dma.vmem_to_hbm [thread:$0]  %s112_s23, 32, %s225_s1, [#allocation4]  }
  0xad   :  { %174 = dma.done.wait [#allocation4], 32  }
  0xae   :  { %175 = vsyncadd [#allocation4], 4294967264 }
  0xaf   :  { %118 = vsyncpa [#allocation3], 1 }
  0xb0   :  { %119 = vsyncpa [#allocation4], 1 }

</bundles_post_ra>
